<compile_context>
chip_gen: v7x
topology: tpu7x:2x2x1
jax: 0.10.0
libtpu: 0.0.40
codegen_flags: <defaults>
</compile_context>

<pallas_src>
import functools

import jax
import jax.numpy as jnp
from jax.experimental import pallas as pl
from jax.experimental.pallas import tpu as pltpu


# ---------------------------------------------------------------------------
# helpers
# ---------------------------------------------------------------------------
def _round_up(x, m):
    return (x + m - 1) // m * m


def _working_set_bytes(tile_p, k_pad, c_pad):
    # double-buffered bf16 patches + bf16 weights + f32 output tile + params
    return (2 * tile_p * k_pad * 2
            + 2 * k_pad * c_pad * 2
            + 2 * tile_p * c_pad * 4
            + 16 * c_pad * 4)


def _choose_tile_p(P, k_pad, c_pad, target_rows=1024, ws_budget=24 * 2 ** 20):
    tile = min(target_rows, _round_up(P, 8))
    while tile > 8 and _working_set_bytes(tile, k_pad, c_pad) > ws_budget:
        tile = max(8, _round_up(tile // 2, 8))
    return tile


def _vmem_limit(tile_p, k_pad, c_pad):
    ws = _working_set_bytes(tile_p, k_pad, c_pad)
    return int(min(max(3 * ws, 16 * 2 ** 20), 48 * 2 ** 20))


# ---------------------------------------------------------------------------
# im2col glue in NHWC (pure slicing / reshape — no compute, no transposes)
# ---------------------------------------------------------------------------
def im2col_nhwc(x_nhwc, k, stride, pad):
    N, H, W, C = x_nhwc.shape
    if pad > 0:
        x_nhwc = jnp.pad(x_nhwc, ((0, 0), (pad, pad), (pad, pad), (0, 0)))
    Hout = (H + 2 * pad - k) // stride + 1
    Wout = (W + 2 * pad - k) // stride + 1
    cols = []
    for i in range(k):
        for j in range(k):
            cols.append(
                x_nhwc[:, i:i + stride * Hout:stride, j:j + stride * Wout:stride, :]
            )
    # (N, Hout, Wout, k*k, C) -> column order (kh, kw, C)
    p = jnp.stack(cols, axis=3)
    return p.reshape(N * Hout * Wout, k * k * C), Hout, Wout


# ---------------------------------------------------------------------------
# Pallas kernels
# ---------------------------------------------------------------------------
def _matmul_act_kernel(x_ref, w_ref, b_ref, o_ref, *, act):
    # (TILE_P, K) @ (K, Cout) on the MXU, f32 accumulation
    y = jnp.dot(x_ref[...], w_ref[...], preferred_element_type=jnp.float32)
    y = y + b_ref[...]
    if act == "leaky":
        y = jnp.where(y > 0, y, 0.2 * y)
    elif act == "sigmoid":
        y = 1.0 / (1.0 + jnp.exp(-y))
    o_ref[...] = y.astype(o_ref.dtype)


def _matmul_stats_kernel(x_ref, w_ref, b_ref, y_ref, sum_ref, ssq_ref, *,
                         tile_p, p_valid, need_mask):
    i = pl.program_id(0)
    y = jnp.dot(x_ref[...], w_ref[...], preferred_element_type=jnp.float32)
    y = y + b_ref[...]
    y_ref[...] = y

    @pl.when(i == 0)
    def _init():
        sum_ref[...] = jnp.zeros_like(sum_ref)
        ssq_ref[...] = jnp.zeros_like(ssq_ref)

    if need_mask:
        rows = i * tile_p + jax.lax.broadcasted_iota(jnp.int32, y.shape, 0)
        ym = jnp.where(rows < p_valid, y, 0.0)
    else:
        ym = y
    sum_ref[...] += jnp.sum(ym, axis=0, keepdims=True)
    ssq_ref[...] += jnp.sum(ym * ym, axis=0, keepdims=True)


def _bn_act_kernel(y_ref, sum_ref, ssq_ref, g_ref, be_ref, o_ref, *, count):
    y = y_ref[...]
    inv_n = 1.0 / count
    mean = sum_ref[...] * inv_n
    var = jnp.maximum(ssq_ref[...] * inv_n - mean * mean, 0.0)   # biased var
    inv = jax.lax.rsqrt(var + 1e-5)
    scale = g_ref[...] * inv
    shift = be_ref[...] - mean * scale
    z = y * scale + shift
    o_ref[...] = jnp.where(z > 0, z, 0.2 * z).astype(o_ref.dtype)


# ---------------------------------------------------------------------------
# One fused conv layer (matmul [+ BN] + activation)
# ---------------------------------------------------------------------------
def fused_conv_layer(patches, w_mat, bias, gamma, beta, *, use_bn, act):
    P, K = patches.shape
    cout = w_mat.shape[1]

    K_pad = _round_up(K, 128)
    C_pad = _round_up(cout, 128)
    tile_p = _choose_tile_p(P, K_pad, C_pad)
    P_pad = _round_up(P, tile_p)
    grid = (P_pad // tile_p,)
    vmem_limit = _vmem_limit(tile_p, K_pad, C_pad)

    # zero-pad to lane/sublane-friendly shapes; cast matmul operands to bf16
    patches_p = jnp.pad(patches, ((0, P_pad - P), (0, K_pad - K))).astype(jnp.bfloat16)
    w_p = jnp.pad(w_mat, ((0, K_pad - K), (0, C_pad - cout))).astype(jnp.bfloat16)
    b_p = jnp.pad(bias, (0, C_pad - cout)).reshape(1, C_pad).astype(jnp.float32)

    mm_in_specs = [
        pl.BlockSpec((tile_p, K_pad), lambda i: (i, 0)),
        pl.BlockSpec((K_pad, C_pad), lambda i: (0, 0)),
        pl.BlockSpec((1, C_pad), lambda i: (0, 0)),
    ]
    y_spec = pl.BlockSpec((tile_p, C_pad), lambda i: (i, 0))
    row_spec = pl.BlockSpec((1, C_pad), lambda i: (0, 0))
    mm_bytes = P_pad * K_pad * 2 + K_pad * C_pad * 2 + P_pad * C_pad * 4

    if not use_bn:
        out = pl.pallas_call(
            functools.partial(_matmul_act_kernel, act=act),
            out_shape=jax.ShapeDtypeStruct((P_pad, C_pad), jnp.float32),
            grid=grid,
            in_specs=mm_in_specs,
            out_specs=y_spec,
            compiler_params=pltpu.CompilerParams(
                dimension_semantics=("parallel",),
                vmem_limit_bytes=vmem_limit),
            cost_estimate=pl.CostEstimate(
                flops=2 * P_pad * K_pad * C_pad,
                transcendentals=P_pad * C_pad if act == "sigmoid" else 0,
                bytes_accessed=mm_bytes),
        )(patches_p, w_p, b_p)
        return out[:P, :cout]

    # --- BN path: pass 1 (matmul + bias + per-channel sum / sumsq) ----------
    y, s, ss = pl.pallas_call(
        functools.partial(_matmul_stats_kernel, tile_p=tile_p, p_valid=P,
                          need_mask=(P_pad != P)),
        out_shape=(jax.ShapeDtypeStruct((P_pad, C_pad), jnp.float32),
                   jax.ShapeDtypeStruct((1, C_pad), jnp.float32),
                   jax.ShapeDtypeStruct((1, C_pad), jnp.float32)),
        grid=grid,
        in_specs=mm_in_specs,
        out_specs=(y_spec, row_spec, row_spec),
        compiler_params=pltpu.CompilerParams(
            dimension_semantics=("arbitrary",),   # sum/ssq are accumulators
            vmem_limit_bytes=vmem_limit),
        cost_estimate=pl.CostEstimate(
            flops=2 * P_pad * K_pad * C_pad + 3 * P_pad * C_pad,
            transcendentals=0,
            bytes_accessed=mm_bytes),
    )(patches_p, w_p, b_p)

    g_p = jnp.pad(gamma, (0, C_pad - cout)).reshape(1, C_pad).astype(jnp.float32)
    be_p = jnp.pad(beta, (0, C_pad - cout)).reshape(1, C_pad).astype(jnp.float32)

    # --- BN path: pass 2 (normalize + affine + LeakyReLU) -------------------
    out = pl.pallas_call(
        functools.partial(_bn_act_kernel, count=float(P)),
        out_shape=jax.ShapeDtypeStruct((P_pad, C_pad), jnp.float32),
        grid=grid,
        in_specs=[y_spec, row_spec, row_spec, row_spec, row_spec],
        out_specs=y_spec,
        compiler_params=pltpu.CompilerParams(
            dimension_semantics=("parallel",),
            vmem_limit_bytes=vmem_limit),
        cost_estimate=pl.CostEstimate(
            flops=4 * P_pad * C_pad,
            transcendentals=C_pad,
            bytes_accessed=2 * P_pad * C_pad * 4),
    )(y, s, ss, g_p, be_p)
    return out[:P, :cout]


# ---------------------------------------------------------------------------
# Parameter construction (deterministic, matches nn.Module shapes)
# ---------------------------------------------------------------------------
def make_params(key, ndf, nc, img_size):
    ds = img_size // 2 ** 4
    # (cin, cout, kernel, stride, pad, use_bn, act)
    specs = [
        (nc,      ndf,     4,  2, 1, False, "leaky"),
        (ndf,     ndf * 2, 4,  2, 1, True,  "leaky"),
        (ndf * 2, ndf * 4, 4,  2, 1, True,  "leaky"),
        (ndf * 4, ndf * 8, 4,  2, 1, True,  "leaky"),
        (ndf * 8, 1,       ds, 1, 0, False, "sigmoid"),
    ]
    params = []
    for (cin, cout, k, stride, pad, use_bn, act) in specs:
        key, sub = jax.random.split(key)
        w = 0.02 * jax.random.normal(sub, (cout, cin, k, k), dtype=jnp.float32)
        params.append(dict(
            w=w,
            b=jnp.zeros((cout,), jnp.float32),
            gamma=jnp.ones((cout,), jnp.float32),
            beta=jnp.zeros((cout,), jnp.float32),
            k=k, stride=stride, pad=pad, use_bn=use_bn, act=act))
    return params


# ---------------------------------------------------------------------------
# Full discriminator forward (NCHW in, NCHW out; NHWC internally)
# ---------------------------------------------------------------------------
def discriminator_forward(x_nchw, params):
    x = x_nchw.transpose(0, 2, 3, 1)                      # NHWC internally
    for layer in params:
        N = x.shape[0]
        cout, cin, k, _ = layer["w"].shape
        patches, Hout, Wout = im2col_nhwc(x, layer["k"], layer["stride"], layer["pad"])
        K = patches.shape[1]
        # torch weight (Cout, Cin, kh, kw) -> (kh, kw, Cin, Cout) -> (K, Cout)
        # matching the im2col (kh, kw, C) column order.
        w_mat = layer["w"].transpose(2, 3, 1, 0).reshape(K, cout)
        y = fused_conv_layer(
            patches, w_mat, layer["b"], layer["gamma"], layer["beta"],
            use_bn=layer["use_bn"], act=layer["act"])
        x = y.reshape(N, Hout, Wout, cout)                 # stay NHWC
    return x.transpose(0, 3, 1, 2)                         # back to NCHW


if __name__ == "__main__":
    # Small-shape instantiation consistent with the module:
    # img_size must be a multiple of 16 (four stride-2 convs); use 16 -> ds_size = 1.
    batch, nc, img_size, ndf = 2, 3, 16, 16

    key = jax.random.PRNGKey(0)
    key, xkey = jax.random.split(key)
    x = jax.random.normal(xkey, (batch, nc, img_size, img_size), dtype=jnp.float32)

    params = make_params(key, ndf=ndf, nc=nc, img_size=img_size)

    out = discriminator_forward(x, params)
    out = jax.block_until_ready(out)

    assert out.shape == (batch, 1, 1, 1), out.shape
    assert bool(jnp.all(jnp.isfinite(out)))
    assert bool(jnp.all((out >= 0.0) & (out <= 1.0)))  # sigmoid output range
    print("KERNEL_OK")
</pallas_src>

<mosaic_0001>
module attributes {stable_mosaic.version = 11 : i64} {
  func.func @_matmul_act_kernel(%arg0: i32, %arg1: memref<128x128xbf16, #tpu.memory_space<vmem>>, %arg2: memref<128x128xbf16, #tpu.memory_space<vmem>>, %arg3: memref<1x128xf32, #tpu.memory_space<vmem>>, %arg4: memref<128x128xf32, #tpu.memory_space<vmem>>) attributes {dimension_semantics = [#tpu.dimension_semantics<parallel>], iteration_bounds = array<i64: 1>, scalar_prefetch = 0 : i64, scratch_operands = 0 : i64, tpu.core_type = #tpu.core_type<tc>, window_params = [{transform_indices = @transform_0, window_bounds = array<i64: 128, 128>}, {pipeline_mode = #tpu.pipeline_mode<synchronous>, transform_indices = @transform_1, window_bounds = array<i64: 128, 128>}, {pipeline_mode = #tpu.pipeline_mode<synchronous>, transform_indices = @transform_2, window_bounds = array<i64: 1, 128>}, {transform_indices = @transform_3, window_bounds = array<i64: 128, 128>}]} {
    %c0 = arith.constant 0 : index
    %c0_0 = arith.constant 0 : index
    %0 = vector.load %arg1[%c0, %c0_0] : memref<128x128xbf16, #tpu.memory_space<vmem>>, vector<128x128xbf16>
    %c0_1 = arith.constant 0 : index
    %c0_2 = arith.constant 0 : index
    %1 = vector.load %arg2[%c0_1, %c0_2] : memref<128x128xbf16, #tpu.memory_space<vmem>>, vector<128x128xbf16>
    %cst = arith.constant dense<0.000000e+00> : vector<128x128xf32>
    %2 = tpu.matmul %0, %1, %cst {dimension_numbers = #tpu.dot_dimension_numbers<[1], [0], [0], [1], [0, 0, 1, 1], [], []>} : vector<128x128xbf16>, vector<128x128xbf16>, vector<128x128xf32> -> vector<128x128xf32>
    %c0_3 = arith.constant 0 : index
    %c0_4 = arith.constant 0 : index
    %3 = vector.load %arg3[%c0_3, %c0_4] : memref<1x128xf32, #tpu.memory_space<vmem>>, vector<1x128xf32>
    %4 = vector.broadcast %3 : vector<1x128xf32> to vector<128x128xf32>
    %5 = arith.addf %2, %4 : vector<128x128xf32>
    %cst_5 = arith.constant 0.000000e+00 : f32
    %6 = vector.broadcast %cst_5 : f32 to vector<128x128xf32>
    %7 = arith.cmpf ogt, %5, %6 : vector<128x128xf32>
    %cst_6 = arith.constant 2.000000e-01 : f32
    %8 = vector.broadcast %cst_6 : f32 to vector<128x128xf32>
    %9 = arith.mulf %8, %5 : vector<128x128xf32>
    %10 = arith.select %7, %5, %9 : vector<128x128xi1>, vector<128x128xf32>
    %c0_7 = arith.constant 0 : index
    %c0_8 = arith.constant 0 : index
    %11 = vector.load %arg4[%c0_7, %c0_8] : memref<128x128xf32, #tpu.memory_space<vmem>>, vector<128x128xf32>
    tpu.vector_store %arg4[%c0_7, %c0_8], %10 {strides = array<i32>} : memref<128x128xf32, #tpu.memory_space<vmem>>, vector<128x128xf32>,
    return
  }
  func.func @transform_0(%arg0: i32) -> (i32, i32) {
    %c0_i32 = arith.constant 0 : i32
    %c0_i32_0 = arith.constant 0 : i32
    return %arg0, %c0_i32 : i32, i32
  }
  func.func @transform_1(%arg0: i32) -> (i32, i32) {
    %c0_i32 = arith.constant 0 : i32
    %c0_i32_0 = arith.constant 0 : i32
    %c0_i32_1 = arith.constant 0 : i32
    return %c0_i32, %c0_i32_0 : i32, i32
  }
  func.func @transform_2(%arg0: i32) -> (i32, i32) {
    %c0_i32 = arith.constant 0 : i32
    %c0_i32_0 = arith.constant 0 : i32
    %c0_i32_1 = arith.constant 0 : i32
    return %c0_i32, %c0_i32_0 : i32, i32
  }
  func.func @transform_3(%arg0: i32) -> (i32, i32) {
    %c0_i32 = arith.constant 0 : i32
    %c0_i32_0 = arith.constant 0 : i32
    return %arg0, %c0_i32 : i32, i32
  }
}

</mosaic_0001>

<bundles_post_ra>
// kernel: tpu_custom_call.1
= control target key start
LH: loop header
LB: loop body
LE: loop exit
PB: predicated region body
PF: predicated region fallthrough
CT: control target
= control target key end

     0   :  { %8 = vsyncpa [#allocation3], 0  ;;  %s618_s0 = inlined_call_operand.hbm [shape: bf16[128,128], index: 0, kind: input, shape index: {}]   ;;  %s619_s1 = inlined_call_operand.hbm [shape: bf16[128,128], index: 1, kind: input, shape index: {}]   ;;  %s620_s2 = inlined_call_operand.vmem [shape: f32[1,128], index: 2, kind: input, shape index: {}]   ;;  %s621_s3 = inlined_call_operand.hbm [shape: f32[128,128], index: 3, kind: output, shape index: {}]  }
   0x1   :  { %9 = vsyncpa [#allocation6], 0 }
   0x2   :  { %10 = vsyncpa [#allocation4], 0  ;;  %s534_s12 = smov [#allocation2]   ;;  %s462_s16 = scalar_lea.hbm %s618_s0, 1024 }
   0x3   :  { %s16_s13 = sshll.u32 %s534_s12, 4  ;;  %p463_p0 = scmp.ne.s32.totalorder %s618_s0, %s462_s16  ;;  %s17_s13 = int_to_ptr.vmem [resolvable:$true] %s16_s13 }
   0x4   :  { %p466_p1 = scmp.lt.u32.totalorder %s462_s16, %s618_s0 }
   0x6   :  { %p468_p2 = pnand %p466_p1, %p463_p0 }
   0x8   :  { %471 = shalt.err (!%p468_p2)
}
   0x9   :  { %s472_s21 = scalar_lea.vmem %s17_s13, 1024  ;;  %p477_p4 = scmp.lt.s32.totalorder %s17_s13, %s17_s13 }
   0xa   :  { %p473_p3 = scmp.ne.s32.totalorder %s17_s13, %s472_s21  ;;  %p478_p5 = scmp.lt.s32.totalorder %s472_s21, %s472_s21 }
   0xc   :  { %p479_p6 = por %p478_p5, %p477_p4 }
   0xe   :  { %p480_p7 = pnand %p479_p6, %p473_p3 }
  0x10   :  { %483 = shalt.err (!%p480_p7)
}
  0x11   :  { %s535_s22 = smov 64   ;;  %s536_s23 = smov 4  }
  0x12   :  { %22 = dma.hbm_to_vmem [thread:$0]  %s618_s0, 1024, %s17_s13, [#allocation3], %s535_s22, %s535_s22, %s536_s23  }
  0x13   :  { %s537_s26 = smov [#allocation5]   ;;  %s484_s30 = scalar_lea.hbm %s619_s1, 1024 }
  0x14   :  { %s28_s27 = sshll.u32 %s537_s26, 4  ;;  %p485_p8 = scmp.ne.s32.totalorder %s619_s1, %s484_s30  ;;  %s29_s27 = int_to_ptr.vmem [resolvable:$true] %s28_s27 }
  0x15   :  { %p488_p9 = scmp.lt.u32.totalorder %s484_s30, %s619_s1 }
  0x17   :  { %p490_p10 = pnand %p488_p9, %p485_p8 }
  0x19   :  { %493 = shalt.err (!%p490_p10)
}
  0x1a   :  { %s494_s8 = scalar_lea.vmem %s29_s27, 1024  ;;  %p499_p12 = scmp.lt.s32.totalorder %s29_s27, %s29_s27 }
  0x1b   :  { %p495_p11 = scmp.ne.s32.totalorder %s29_s27, %s494_s8  ;;  %p500_p13 = scmp.lt.s32.totalorder %s494_s8, %s494_s8 }
  0x1d   :  { %p501_p0 = por %p500_p13, %p499_p12 }
  0x1f   :  { %p502_p1 = pnand %p501_p0, %p495_p11 }
  0x21   :  { %505 = shalt.err (!%p502_p1)
}
  0x22   :  { %34 = dma.hbm_to_vmem [thread:$0]  %s619_s1, 1024, %s29_s27, [#allocation6], %s535_s22, %s535_s22, %s536_s23  }
  0x23   :  { %528 = dma.done.wait [#allocation3], 1024  }
  0x24   :  { %529 = vsyncadd [#allocation3], 4294966272 }
  0x25   :  { %530 = dma.done.wait [#allocation6], 1024  }
  0x26   :  { %531 = vsyncadd [#allocation6], 4294966272  ;;  %v446_v0 = vld [vmem:[#allocation5] sm:$0xff]   ;;  %v447_v1 = vld [vmem:[#allocation5 + $0x8] sm:$0xff]  }
  0x27   :  { %391 = vmatprep.subr.bf16.mxu0 %v446_v0  ;;  %423 = vmatprep.subr.bf16.mxu1 %v446_v0  ;;  %v448_v2 = vld [vmem:[#allocation5 + $0x10] sm:$0xff]   ;;  %v449_v3 = vld [vmem:[#allocation5 + $0x18] sm:$0xff]   ;;  %v454_v4 = vld [vmem:[#allocation2] sm:$0xff]  }
  0x28   :  { %392 = vmatpush3.bf16.msra.mxu0 %v446_v0  ;;  %431 = vmatpush3.bf16.msra.mxu1 %v446_v0  ;;  %v455_v5 = vld [vmem:[#allocation2 + $0x20] sm:$0xff]   ;;  %v451_v7 = vld [vmem:[#allocation5 + $0x28] sm:$0xff]   ;;  %v452_v8 = vld [vmem:[#allocation5 + $0x30] sm:$0xff]  }
  0x29   :  { %393 = vmatprep.subr.bf16.mxu0 %v447_v1  ;;  %424 = vmatprep.subr.bf16.mxu1 %v447_v1  ;;  %v450_v6 = vld [vmem:[#allocation5 + $0x20] sm:$0xff]   ;;  %v453_v9 = vld [vmem:[#allocation5 + $0x38] sm:$0xff]   ;;  %v456_v10 = vld [vmem:[#allocation2 + $0x8] sm:$0xff]  }
  0x2a   :  { %407 = vmatprep.mubr.bf16.mxu0 %v454_v4  ;;  %415 = vmatprep.mubr.bf16.mxu1 %v455_v5  ;;  %v457_v11 = vld [vmem:[#allocation2 + $0x28] sm:$0xff]   ;;  %v458_v12 = vld [vmem:[#allocation2 + $0x10] sm:$0xff]   ;;  %v460_v14 = vld [vmem:[#allocation2 + $0x18] sm:$0xff]  }
  0x2b   :  { %v459_v13 = vld [vmem:[#allocation2 + $0x30] sm:$0xff]   ;;  %v461_v15 = vld [vmem:[#allocation2 + $0x38] sm:$0xff]   ;;  %v588_v16 = vld [vmem:[%s620_s2] ss:$0 sm:$0xff]  ;;  %s538_s2 = smov [#allocation7]  }
  0x2c   :  { %394 = vmatpush3.bf16.msra.mxu0 %v447_v1  ;;  %432 = vmatpush3.bf16.msra.mxu1 %v447_v1  ;;  %s345_s11 = sshll.u32 %s538_s2, 4  ;;  %s346_s11 = int_to_ptr.vmem [resolvable:$true] %s345_s11 }
  0x2d   :  { %395 = vmatprep.subr.bf16.mxu0 %v448_v2  ;;  %425 = vmatprep.subr.bf16.mxu1 %v448_v2  ;;  %s506_s12 = scalar_lea.vmem %s346_s11, 2048  ;;  %p511_p3 = scmp.lt.s32.totalorder %s346_s11, %s346_s11 }
  0x2e   :  { %p507_p2 = scmp.ne.s32.totalorder %s346_s11, %s506_s12  ;;  %p512_p4 = scmp.lt.s32.totalorder %s506_s12, %s506_s12 }
  0x30   :  { %396 = vmatpush3.bf16.msra.mxu0 %v448_v2  ;;  %433 = vmatpush3.bf16.msra.mxu1 %v448_v2  ;;  %p513_p5 = por %p512_p4, %p511_p3 }
  0x31   :  { %397 = vmatprep.subr.bf16.mxu0 %v449_v3  ;;  %426 = vmatprep.subr.bf16.mxu1 %v449_v3 }
  0x32   :  { %p514_p6 = pnand %p513_p5, %p507_p2 }
  0x34   :  { %398 = vmatpush3.bf16.msra.mxu0 %v449_v3  ;;  %434 = vmatpush3.bf16.msra.mxu1 %v449_v3 }
  0x35   :  { %399 = vmatprep.subr.bf16.mxu0 %v450_v6  ;;  %427 = vmatprep.subr.bf16.mxu1 %v450_v6 }
  0x38   :  { %400 = vmatpush3.bf16.msra.mxu0 %v450_v6  ;;  %435 = vmatpush3.bf16.msra.mxu1 %v450_v6 }
  0x39   :  { %401 = vmatprep.subr.bf16.mxu0 %v451_v7  ;;  %428 = vmatprep.subr.bf16.mxu1 %v451_v7 }
  0x3c   :  { %402 = vmatpush3.bf16.msra.mxu0 %v451_v7  ;;  %436 = vmatpush3.bf16.msra.mxu1 %v451_v7 }
  0x3d   :  { %403 = vmatprep.subr.bf16.mxu0 %v452_v8  ;;  %429 = vmatprep.subr.bf16.mxu1 %v452_v8 }
  0x40   :  { %404 = vmatpush3.bf16.msra.mxu0 %v452_v8  ;;  %437 = vmatpush3.bf16.msra.mxu1 %v452_v8 }
  0x41   :  { %405 = vmatprep.subr.bf16.mxu0 %v453_v9  ;;  %430 = vmatprep.subr.bf16.mxu1 %v453_v9 }
  0x44   :  { %406 = vmatpush3.bf16.msra.mxu0 %v453_v9  ;;  %438 = vmatpush3.bf16.msra.mxu1 %v453_v9 }
  0x47   :  { %408 = vmatmul.mubr.bf16.vlgmr.msra.gmra.mrb[0].mxu0 %v456_v10  ;;  %416 = vmatmul.mubr.bf16.vlgmr.msra.gmra.mrb[0].mxu1 %v457_v11 }
  0x48   :  { %411 = vmatprep.mubr.bf16.mxu0 %v458_v12  ;;  %419 = vmatprep.mubr.bf16.mxu1 %v459_v13 }
  0x4f   :  { %412 = vmatmul.mubr.bf16.gmra.mrb[4].mxu0 %v460_v14  ;;  %420 = vmatmul.mubr.bf16.gmra.mrb[4].mxu1 %v461_v15 }
 0x11a   :  { %v409_v17 = vpop.f32.mrb[0].mxu0  ;;  %v417_v18 = vpop.f32.mrb[0].mxu1 }
 0x11b   :  { %v222_v19 = vadd.f32 %v409_v17, %v588_v16  ;;  %v254_v20 = vadd.f32 %v417_v18, %v588_v16  ;;  %v213_v21 = vpop.f32.mrb[1].mxu0  ;;  %v245_v22 = vpop.f32.mrb[1].mxu1 }
 0x11c   :  { %v214_v23 = vadd.f32 %v588_v16, %v213_v21  ;;  %v246_v24 = vadd.f32 %v588_v16, %v245_v22  ;;  %v410_v25 = vpop.f32.mrb[2].mxu0  ;;  %v418_v26 = vpop.f32.mrb[2].mxu1 }
 0x11d   :  { %vm278_vm0 = vcmp.gt.f32.partialorder %v222_v19, 0.0  ;;  %v294_v27 = vmul.f32 0.2, %v222_v19  ;;  %vm286_vm1 = vcmp.gt.f32.partialorder %v254_v20, 0.0  ;;  %v302_v28 = vmul.f32 0.2, %v254_v20 }
 0x11e   :  { %vm276_vm2 = vcmp.gt.f32.partialorder %v214_v23, 0.0  ;;  %v292_v29 = vmul.f32 0.2, %v214_v23  ;;  %vm284_vm3 = vcmp.gt.f32.partialorder %v246_v24, 0.0  ;;  %v300_v30 = vmul.f32 0.2, %v246_v24 }
 0x11f   :  { %v310_v31 = vsel %vm278_vm0, %v222_v19, %v294_v27  ;;  %v318_v32 = vsel %vm286_vm1, %v254_v20, %v302_v28  ;;  %v225_v33 = vadd.f32 %v410_v25, %v588_v16  ;;  %v257_v34 = vadd.f32 %v418_v26, %v588_v16  ;;  %v216_v35 = vpop.f32.mrb[3].mxu0  ;;  %v248_v36 = vpop.f32.mrb[3].mxu1 }
 0x120   :  { %326 = vst [vmem:[#allocation7 + $0x10] sm:$0xff] %v310_v31  ;;  %334 = vst [vmem:[#allocation7 + $0x50] sm:$0xff] %v318_v32  ;;  %v308_v37 = vsel %vm276_vm2, %v214_v23, %v292_v29  ;;  %v316_v38 = vsel %vm284_vm3, %v246_v24, %v300_v30  ;;  %v217_v39 = vadd.f32 %v588_v16, %v216_v35 }
 0x121   :  { %v249_v40 = vadd.f32 %v588_v16, %v248_v36  ;;  %324 = vst [vmem:[#allocation7] sm:$0xff] %v308_v37  ;;  %332 = vst [vmem:[#allocation7 + $0x40] sm:$0xff] %v316_v38  ;;  %vm279_vm4 = vcmp.gt.f32.partialorder %v225_v33, 0.0  ;;  %v295_v41 = vmul.f32 0.2, %v225_v33  ;;  %vm287_vm5 = vcmp.gt.f32.partialorder %v257_v34, 0.0 }
 0x122   :  { %v303_v42 = vmul.f32 0.2, %v257_v34  ;;  %vm277_vm6 = vcmp.gt.f32.partialorder %v217_v39, 0.0  ;;  %v293_v43 = vmul.f32 0.2, %v217_v39  ;;  %v413_v47 = vpop.f32.mrb[4].mxu0 }
 0x123   :  { %vm285_vm7 = vcmp.gt.f32.partialorder %v249_v40, 0.0  ;;  %v301_v44 = vmul.f32 0.2, %v249_v40  ;;  %v311_v45 = vsel %vm279_vm4, %v225_v33, %v295_v41  ;;  %v421_v48 = vpop.f32.mrb[4].mxu1  ;;  %v238_v51 = vadd.f32 %v413_v47, %v588_v16  ;;  %v229_v53 = vpop.f32.mrb[5].mxu0 }
 0x124   :  { %v319_v46 = vsel %vm287_vm5, %v257_v34, %v303_v42  ;;  %327 = vst [vmem:[#allocation7 + $0x18] sm:$0xff] %v311_v45  ;;  %v309_v49 = vsel %vm277_vm6, %v217_v39, %v293_v43  ;;  %v270_v52 = vadd.f32 %v421_v48, %v588_v16  ;;  %v261_v54 = vpop.f32.mrb[5].mxu1  ;;  %v230_v55 = vadd.f32 %v588_v16, %v229_v53  ;;  %v414_v57 = vpop.f32.mrb[6].mxu0 }
 0x125   :  { %335 = vst [vmem:[#allocation7 + $0x58] sm:$0xff] %v319_v46  ;;  %v317_v50 = vsel %vm285_vm7, %v249_v40, %v301_v44  ;;  %325 = vst [vmem:[#allocation7 + $0x8] sm:$0xff] %v309_v49  ;;  %v262_v56 = vadd.f32 %v588_v16, %v261_v54  ;;  %v422_v58 = vpop.f32.mrb[6].mxu1  ;;  %vm282_vm8 = vcmp.gt.f32.partialorder %v238_v51, 0.0  ;;  %v298_v59 = vmul.f32 0.2, %v238_v51 }
 0x126   :  { %333 = vst [vmem:[#allocation7 + $0x48] sm:$0xff] %v317_v50  ;;  %vm290_vm9 = vcmp.gt.f32.partialorder %v270_v52, 0.0  ;;  %v306_v60 = vmul.f32 0.2, %v270_v52  ;;  %vm280_vm10 = vcmp.gt.f32.partialorder %v230_v55, 0.0  ;;  %v241_v1 = vadd.f32 %v414_v57, %v588_v16  ;;  %v232_v3 = vpop.f32.mrb[7].mxu0 }
 0x127   :  { %v296_v61 = vmul.f32 0.2, %v230_v55  ;;  %vm288_vm11 = vcmp.gt.f32.partialorder %v262_v56, 0.0  ;;  %v304_v62 = vmul.f32 0.2, %v262_v56  ;;  %v314_v63 = vsel %vm282_vm8, %v238_v51, %v298_v59  ;;  %v264_v4 = vpop.f32.mrb[7].mxu1 }
 0x128   :  { %v322_v0 = vsel %vm290_vm9, %v270_v52, %v306_v60  ;;  %v273_v2 = vadd.f32 %v422_v58, %v588_v16  ;;  %330 = vst [vmem:[#allocation7 + $0x30] sm:$0xff] %v314_v63  ;;  %v233_v7 = vadd.f32 %v588_v16, %v232_v3  ;;  %v265_v8 = vadd.f32 %v588_v16, %v264_v4 }
 0x129   :  { %338 = vst [vmem:[#allocation7 + $0x70] sm:$0xff] %v322_v0  ;;  %v312_v5 = vsel %vm280_vm10, %v230_v55, %v296_v61  ;;  %v320_v6 = vsel %vm288_vm11, %v262_v56, %v304_v62  ;;  %vm283_vm12 = vcmp.gt.f32.partialorder %v241_v1, 0.0  ;;  %v299_v9 = vmul.f32 0.2, %v241_v1 }
 0x12a   :  { %328 = vst [vmem:[#allocation7 + $0x20] sm:$0xff] %v312_v5  ;;  %336 = vst [vmem:[#allocation7 + $0x60] sm:$0xff] %v320_v6  ;;  %vm291_vm13 = vcmp.gt.f32.partialorder %v273_v2, 0.0  ;;  %v307_v10 = vmul.f32 0.2, %v273_v2  ;;  %vm281_vm14 = vcmp.gt.f32.partialorder %v233_v7, 0.0 }
 0x12b   :  { %v297_v11 = vmul.f32 0.2, %v233_v7  ;;  %vm289_vm15 = vcmp.gt.f32.partialorder %v265_v8, 0.0  ;;  %v305_v12 = vmul.f32 0.2, %v265_v8  ;;  %v315_v13 = vsel %vm283_vm12, %v241_v1, %v299_v9 }
 0x12c   :  { %v323_v14 = vsel %vm291_vm13, %v273_v2, %v307_v10  ;;  %331 = vst [vmem:[#allocation7 + $0x38] sm:$0xff] %v315_v13 }
 0x12d   :  { %339 = vst [vmem:[#allocation7 + $0x78] sm:$0xff] %v323_v14  ;;  %v313_v15 = vsel %vm281_vm14, %v233_v7, %v297_v11  ;;  %v321_v17 = vsel %vm289_vm15, %v265_v8, %v305_v12 }
 0x12e   :  { %329 = vst [vmem:[#allocation7 + $0x28] sm:$0xff] %v313_v15  ;;  %337 = vst [vmem:[#allocation7 + $0x68] sm:$0xff] %v321_v17 }
 0x12f   :  { %517 = shalt.err (!%p514_p6)
}
 0x130   :  { %s518_s15 = scalar_lea.hbm %s621_s3, 2048 }
 0x131   :  { %p519_p7 = scmp.ne.s32.totalorder %s621_s3, %s518_s15  ;;  %p522_p8 = scmp.lt.u32.totalorder %s518_s15, %s621_s3 }
 0x133   :  { %p524_p9 = pnand %p522_p8, %p519_p7 }
 0x135   :  { %527 = shalt.err (!%p524_p9)
}
 0x136   :  { %s539_s20 = smov 128   ;;  %s540_s21 = smov 8  }
 0x137   :  { %351 = dma.vmem_to_hbm [thread:$0]  %s346_s11, 2048, %s621_s3, [#allocation4], %s539_s20, %s539_s20, %s540_s21  }
 0x138   :  { %532 = dma.done.wait [#allocation4], 2048  }
 0x139   :  { %533 = vsyncadd [#allocation4], 4294965248 }
 0x13a   :  { %355 = vsyncpa [#allocation3], 1 }
 0x13b   :  { %356 = vsyncpa [#allocation6], 1 }
 0x13c   :  { %357 = vsyncpa [#allocation4], 1 }

</bundles_post_ra>
